<compile_context>
chip_gen: v5e
topology: v5e:2x2
jax: 0.10.0
libtpu: 0.0.40
codegen_flags: <defaults>
</compile_context>

<pallas_src>
import jax
import jax.numpy as jnp
from jax.experimental import pallas as pl
from jax.experimental.pallas import tpu as pltpu


def mlp_kernel(x_ref, w1_ref, b1_ref, w2_ref, b2_ref, o_ref):
    # x_ref:  (tile_b, D_in) f32      w1_ref: (D_in, H) bf16   b1_ref: (1, H) f32
    # w2_ref: (H, D_out_pad) bf16     b2_ref: (1, D_out_pad) f32
    # o_ref:  (tile_b, D_out_pad) f32

    # layer_input: Linear(dim_in, dim_hidden). Cast x to bf16 in-kernel (no
    # extra HBM pass), MXU accumulates in f32.
    x_bf = x_ref[...].astype(jnp.bfloat16)
    h = jnp.dot(x_bf, w1_ref[...], preferred_element_type=jnp.float32)
    h = h + b1_ref[...]

    # dropout: nn.Dropout() is the identity in eval mode.
    # TODO(synk): training-mode dropout (p=0.5, scale 1/(1-p)) via pltpu.prng_* if needed.

    # relu (f32 on the VPU)
    h = jnp.maximum(h, 0.0)

    # layer_hidden: Linear(dim_hidden, dim_out_pad). bf16 inputs, f32 accumulate.
    logits = jnp.dot(h.astype(jnp.bfloat16), w2_ref[...],
                     preferred_element_type=jnp.float32) + b2_ref[...]

    # softmax over dim=1 (padded columns have logits = -1e9 -> exp == 0, so the
    # real columns' softmax is unchanged). Approx reciprocal -> EUP slot.
    m = jnp.max(logits, axis=-1, keepdims=True)
    e = jnp.exp(logits - m)
    o_ref[...] = e * pl.reciprocal(jnp.sum(e, axis=-1, keepdims=True), approx=True)


def _round_up(n, m):
    return ((n + m - 1) // m) * m


def _choose_tile(B, target):
    """Pick (tile_b, B_pad).

    - B <= target: a single block covering the whole batch (block dim == full
      array dim is always legal), no padding at all.
    - B > target: tile is a multiple of 8, <= target, capped so the grid keeps
      >= 4 steps (feeds both v7x TensorCores under "parallel"); prefer a tile
      that divides the 8-aligned batch so no extra pad pass over x is needed.
    """
    if B <= target:
        return B, B
    B8 = _round_up(B, 8)
    tile_max = max(128, min((target // 8) * 8, ((B8 // 4) // 8) * 8))
    tile_max = min(tile_max, B8)
    best = 0
    for cand in range(tile_max, max(128, tile_max // 2) - 1, -8):
        if B8 % cand == 0:
            best = cand
            break
    if best:
        return best, B8
    return tile_max, _round_up(B, tile_max)


def mlp_forward(x_nchw, w1, b1, w2, b2, *, tile_b=1024):
    B = x_nchw.shape[0]
    C, H, W = x_nchw.shape[1], x_nchw.shape[-2], x_nchw.shape[-1]
    dim_in = C * H * W
    dim_hidden = w1.shape[1]
    dim_out = w2.shape[1]
    dim_out_pad = max(128, _round_up(dim_out, 128))

    # Flatten exactly like torch: x.view(-1, C*H*W). No dtype cast here — x is
    # streamed as f32 and cast to bf16 inside the kernel.
    x_flat = x_nchw.reshape(B, dim_in)

    # Small resident parameters: w1/w2 in bf16 (halves resident VMEM), biases f32.
    # w2/b2 padded along the output dim for lane-dense stores; padded bias = -1e9
    # so softmax over the padded logits is unchanged.
    w1_bf16 = w1.astype(jnp.bfloat16)
    b1_2d = b1.reshape(1, dim_hidden).astype(jnp.float32)
    w2_p = jnp.zeros((dim_hidden, dim_out_pad), jnp.bfloat16)
    w2_p = w2_p.at[:, :dim_out].set(w2.astype(jnp.bfloat16))
    b2_p = jnp.full((1, dim_out_pad), -1e9, jnp.float32)
    b2_p = b2_p.at[0, :dim_out].set(b2.astype(jnp.float32))

    tile_b, B_pad = _choose_tile(B, tile_b)
    if B_pad != B:
        # Zero pad rows flow through exp/softmax to finite garbage and are sliced off.
        x_flat = jnp.pad(x_flat, ((0, B_pad - B), (0, 0)))

    grid = (B_pad // tile_b,)

    flops = 2 * B_pad * (dim_in * dim_hidden + dim_hidden * dim_out_pad)
    bytes_accessed = (
        B_pad * dim_in * 4              # x (f32)
        + dim_in * dim_hidden * 2       # w1 (bf16)
        + dim_hidden * 4                # b1
        + dim_hidden * dim_out_pad * 2  # w2 (bf16)
        + dim_out_pad * 4               # b2
        + B_pad * dim_out_pad * 4       # output
    )

    # VMEM: double-buffered x/out tiles + resident weights (+ margin).
    resident_bytes = (dim_in * dim_hidden * 2 + dim_hidden * 4
                      + dim_hidden * dim_out_pad * 2 + dim_out_pad * 4)
    vmem_need = (2 * (tile_b * dim_in * 4 + tile_b * dim_out_pad * 4)
                 + 2 * resident_bytes + (2 << 20))
    vmem_limit = int(min(max(32 << 20, vmem_need), 100 << 20))

    out = pl.pallas_call(
        mlp_kernel,
        out_shape=jax.ShapeDtypeStruct((B_pad, dim_out_pad), jnp.float32),
        grid=grid,
        in_specs=[
            pl.BlockSpec((tile_b, dim_in), lambda i: (i, 0)),           # x: streamed
            pl.BlockSpec((dim_in, dim_hidden), lambda i: (0, 0)),       # w1: resident
            pl.BlockSpec((1, dim_hidden), lambda i: (0, 0)),            # b1: resident
            pl.BlockSpec((dim_hidden, dim_out_pad), lambda i: (0, 0)),  # w2: resident
            pl.BlockSpec((1, dim_out_pad), lambda i: (0, 0)),           # b2: resident
        ],
        out_specs=pl.BlockSpec((tile_b, dim_out_pad), lambda i: (i, 0)),
        compiler_params=pltpu.CompilerParams(
            dimension_semantics=("parallel",),
            vmem_limit_bytes=vmem_limit,
        ),
        cost_estimate=pl.CostEstimate(
            flops=flops,
            transcendentals=B_pad * dim_out_pad,
            bytes_accessed=bytes_accessed,
        ),
    )(x_flat, w1_bf16, b1_2d, w2_p, b2_p)

    return out[:B, :dim_out]


def init_params(key, dim_in, dim_hidden, dim_out):
    # Deterministic init mimicking nn.Linear default: U(-1/sqrt(fan_in), 1/sqrt(fan_in))
    k1, k2, k3, k4 = jax.random.split(key, 4)
    lim1 = 1.0 / jnp.sqrt(jnp.float32(dim_in))
    lim2 = 1.0 / jnp.sqrt(jnp.float32(dim_hidden))
    w1 = jax.random.uniform(k1, (dim_in, dim_hidden), jnp.float32, -lim1, lim1)
    b1 = jax.random.uniform(k2, (dim_hidden,), jnp.float32, -lim1, lim1)
    w2 = jax.random.uniform(k3, (dim_hidden, dim_out), jnp.float32, -lim2, lim2)
    b2 = jax.random.uniform(k4, (dim_out,), jnp.float32, -lim2, lim2)
    return w1, b1, w2, b2


if __name__ == "__main__":
    key = jax.random.PRNGKey(0)
    kx, kp = jax.random.split(key)

    # Small shapes consistent with the module: NCHW image input.
    B, C, H, W = 2, 4, 16, 16
    dim_in = C * H * W          # 1024
    dim_hidden = 32
    dim_out = 10

    x = jax.random.normal(kx, (B, C, H, W), jnp.float32)
    w1, b1, w2, b2 = init_params(kp, dim_in, dim_hidden, dim_out)

    y = mlp_forward(x, w1, b1, w2, b2)
    y = jax.block_until_ready(y)
    assert y.shape == (B, dim_out)

    # Reference 1: bf16-matched (same dtype policy as the kernel).
    x_flat = x.reshape(B, dim_in)
    h_bf = jnp.dot(x_flat.astype(jnp.bfloat16), w1.astype(jnp.bfloat16),
                   preferred_element_type=jnp.float32) + b1
    h_bf = jnp.maximum(h_bf, 0.0)
    logits_bf = jnp.dot(h_bf.astype(jnp.bfloat16), w2.astype(jnp.bfloat16),
                        preferred_element_type=jnp.float32) + b2
    y_ref_bf = jax.nn.softmax(logits_bf, axis=1)

    # Reference 2: pure f32 (looser tolerance covers bf16 + approx reciprocal).
    h_f32 = jnp.maximum(x_flat @ w1 + b1, 0.0)
    y_ref_f32 = jax.nn.softmax(h_f32 @ w2 + b2, axis=1)

    assert jnp.allclose(y, y_ref_bf, atol=5e-3, rtol=5e-3), \
        f"max abs err vs bf16 ref: {jnp.max(jnp.abs(y - y_ref_bf))}"
    assert jnp.allclose(y, y_ref_f32, atol=3e-2, rtol=3e-2), \
        f"max abs err vs f32 ref: {jnp.max(jnp.abs(y - y_ref_f32))}"
    # NOTE: approx reciprocal -> rows sum to 1 only within ~1e-3.
    assert jnp.allclose(jnp.sum(y, axis=1), 1.0, atol=5e-3)

    print("KERNEL_OK")
</pallas_src>

<mosaic_0001>
module attributes {stable_mosaic.version = 11 : i64} {
  func.func @mlp_kernel(%arg0: i32, %arg1: memref<2x1024xf32, #tpu.memory_space<vmem>>, %arg2: memref<1024x32xbf16, #tpu.memory_space<vmem>>, %arg3: memref<1x32xf32, #tpu.memory_space<vmem>>, %arg4: memref<32x128xbf16, #tpu.memory_space<vmem>>, %arg5: memref<1x128xf32, #tpu.memory_space<vmem>>, %arg6: memref<2x128xf32, #tpu.memory_space<vmem>>) attributes {dimension_semantics = [#tpu.dimension_semantics<parallel>], iteration_bounds = array<i64: 1>, scalar_prefetch = 0 : i64, scratch_operands = 0 : i64, tpu.core_type = #tpu.core_type<tc>, window_params = [{transform_indices = @transform_0, window_bounds = array<i64: 2, 1024>}, {pipeline_mode = #tpu.pipeline_mode<synchronous>, transform_indices = @transform_1, window_bounds = array<i64: 1024, 32>}, {pipeline_mode = #tpu.pipeline_mode<synchronous>, transform_indices = @transform_2, window_bounds = array<i64: 1, 32>}, {pipeline_mode = #tpu.pipeline_mode<synchronous>, transform_indices = @transform_3, window_bounds = array<i64: 32, 128>}, {pipeline_mode = #tpu.pipeline_mode<synchronous>, transform_indices = @transform_4, window_bounds = array<i64: 1, 128>}, {transform_indices = @transform_5, window_bounds = array<i64: 2, 128>}]} {
    %c0 = arith.constant 0 : index
    %c0_0 = arith.constant 0 : index
    %0 = vector.load %arg1[%c0, %c0_0] : memref<2x1024xf32, #tpu.memory_space<vmem>>, vector<2x1024xf32>
    %1 = arith.truncf %0 : vector<2x1024xf32> to vector<2x1024xbf16>
    %c0_1 = arith.constant 0 : index
    %c0_2 = arith.constant 0 : index
    %2 = vector.load %arg2[%c0_1, %c0_2] : memref<1024x32xbf16, #tpu.memory_space<vmem>>, vector<1024x32xbf16>
    %cst = arith.constant dense<0.000000e+00> : vector<2x32xf32>
    %3 = tpu.matmul %1, %2, %cst {dimension_numbers = #tpu.dot_dimension_numbers<[1], [0], [0], [1], [0, 0, 1, 1], [], []>} : vector<2x1024xbf16>, vector<1024x32xbf16>, vector<2x32xf32> -> vector<2x32xf32>
    %c0_3 = arith.constant 0 : index
    %c0_4 = arith.constant 0 : index
    %4 = vector.load %arg3[%c0_3, %c0_4] : memref<1x32xf32, #tpu.memory_space<vmem>>, vector<1x32xf32>
    %5 = vector.broadcast %4 : vector<1x32xf32> to vector<2x32xf32>
    %6 = arith.addf %3, %5 : vector<2x32xf32>
    %cst_5 = arith.constant 0.000000e+00 : f32
    %7 = vector.broadcast %cst_5 : f32 to vector<2x32xf32>
    %8 = arith.maximumf %6, %7 : vector<2x32xf32>
    %9 = arith.truncf %8 : vector<2x32xf32> to vector<2x32xbf16>
    %c0_6 = arith.constant 0 : index
    %c0_7 = arith.constant 0 : index
    %10 = vector.load %arg4[%c0_6, %c0_7] : memref<32x128xbf16, #tpu.memory_space<vmem>>, vector<32x128xbf16>
    %cst_8 = arith.constant dense<0.000000e+00> : vector<2x128xf32>
    %11 = tpu.matmul %9, %10, %cst_8 {dimension_numbers = #tpu.dot_dimension_numbers<[1], [0], [0], [1], [0, 0, 1, 1], [], []>} : vector<2x32xbf16>, vector<32x128xbf16>, vector<2x128xf32> -> vector<2x128xf32>
    %c0_9 = arith.constant 0 : index
    %c0_10 = arith.constant 0 : index
    %12 = vector.load %arg5[%c0_9, %c0_10] : memref<1x128xf32, #tpu.memory_space<vmem>>, vector<1x128xf32>
    %13 = vector.broadcast %12 : vector<1x128xf32> to vector<2x128xf32>
    %14 = arith.addf %11, %13 : vector<2x128xf32>
    %cst_11 = arith.constant dense<0xFF800000> : vector<2xf32>
    %15 = vector.multi_reduction <maximumf>, %14, %cst_11 [1] : vector<2x128xf32> to vector<2xf32>
    %16 = vector.shape_cast %15 : vector<2xf32> to vector<2x1xf32>
    %17 = vector.broadcast %16 : vector<2x1xf32> to vector<2x128xf32>
    %18 = arith.subf %14, %17 : vector<2x128xf32>
    %19 = math.exp %18 : vector<2x128xf32>
    %cst_12 = arith.constant dense<0.000000e+00> : vector<2xf32>
    %20 = vector.multi_reduction <add>, %19, %cst_12 [1] : vector<2x128xf32> to vector<2xf32>
    %21 = vector.shape_cast %20 : vector<2xf32> to vector<2x1xf32>
    %22 = tpu.reciprocal %21 {approx = true} : vector<2x1xf32> -> vector<2x1xf32>
    %23 = vector.broadcast %22 : vector<2x1xf32> to vector<2x128xf32>
    %24 = arith.mulf %19, %23 : vector<2x128xf32>
    %c0_13 = arith.constant 0 : index
    %c0_14 = arith.constant 0 : index
    %25 = vector.load %arg6[%c0_13, %c0_14] : memref<2x128xf32, #tpu.memory_space<vmem>>, vector<2x128xf32>
    tpu.vector_store %arg6[%c0_13, %c0_14], %24 {strides = array<i32>} : memref<2x128xf32, #tpu.memory_space<vmem>>, vector<2x128xf32>,
    return
  }
  func.func @transform_0(%arg0: i32) -> (i32, i32) {
    %c0_i32 = arith.constant 0 : i32
    %c0_i32_0 = arith.constant 0 : i32
    return %arg0, %c0_i32 : i32, i32
  }
  func.func @transform_1(%arg0: i32) -> (i32, i32) {
    %c0_i32 = arith.constant 0 : i32
    %c0_i32_0 = arith.constant 0 : i32
    %c0_i32_1 = arith.constant 0 : i32
    return %c0_i32, %c0_i32_0 : i32, i32
  }
  func.func @transform_2(%arg0: i32) -> (i32, i32) {
    %c0_i32 = arith.constant 0 : i32
    %c0_i32_0 = arith.constant 0 : i32
    %c0_i32_1 = arith.constant 0 : i32
    return %c0_i32, %c0_i32_0 : i32, i32
  }
  func.func @transform_3(%arg0: i32) -> (i32, i32) {
    %c0_i32 = arith.constant 0 : i32
    %c0_i32_0 = arith.constant 0 : i32
    %c0_i32_1 = arith.constant 0 : i32
    return %c0_i32, %c0_i32_0 : i32, i32
  }
  func.func @transform_4(%arg0: i32) -> (i32, i32) {
    %c0_i32 = arith.constant 0 : i32
    %c0_i32_0 = arith.constant 0 : i32
    %c0_i32_1 = arith.constant 0 : i32
    return %c0_i32, %c0_i32_0 : i32, i32
  }
  func.func @transform_5(%arg0: i32) -> (i32, i32) {
    %c0_i32 = arith.constant 0 : i32
    %c0_i32_0 = arith.constant 0 : i32
    return %arg0, %c0_i32 : i32, i32
  }
}

</mosaic_0001>

<bundles_post_ra>
// kernel: tpu_custom_call.1
= control target key start
LH: loop header
LB: loop body
LE: loop exit
PB: predicated region body
PF: predicated region fallthrough
CT: control target
= control target key end

     0   :  { %s1349_s0 = inlined_call_operand.vmem [shape: f32[2,1024], index: 0, kind: input, shape index: {}]   ;;  %s1350_s1 = inlined_call_operand.vmem [shape: bf16[1024,32], index: 1, kind: input, shape index: {}]   ;;  %s1351_s2 = inlined_call_operand.vmem [shape: f32[1,32], index: 2, kind: input, shape index: {}]   ;;  %s1352_s3 = inlined_call_operand.vmem [shape: bf16[32,128], index: 3, kind: input, shape index: {}]   ;;  %s1353_s4 = inlined_call_operand.vmem [shape: f32[1,128], index: 4, kind: input, shape index: {}]   ;;  %s1354_s5 = inlined_call_operand.hbm [shape: f32[2,128], index: 5, kind: output, shape index: {}]  }
   0x1   :  { %v1013_v0 = vld [vmem:[%s1350_s1 + $0x38] sm:$0xff]  ;;  %v1012_v4 = vld [vmem:[%s1350_s1 + $0x30] sm:$0xff]  ;;  %v1011_v8 = vld [vmem:[%s1350_s1 + $0x28] sm:$0xff] }
   0x2   :  { %v1021_v1 = vld [vmem:[%s1350_s1 + $0x78] sm:$0xff]  ;;  %569 = vmatpush.bf16.msra.mxu0 %v1013_v0  ;;  %v1020_v5 = vld [vmem:[%s1350_s1 + $0x70] sm:$0xff]  ;;  %v1019_v9 = vld [vmem:[%s1350_s1 + $0x68] sm:$0xff] }
   0x3   :  { %v1029_v2 = vld [vmem:[%s1350_s1 + $0xb8] sm:$0xff]  ;;  %582 = vmatpush.bf16.msra.mxu1 %v1021_v1  ;;  %v1028_v6 = vld [vmem:[%s1350_s1 + $0xb0] sm:$0xff]  ;;  %v1027_v10 = vld [vmem:[%s1350_s1 + $0xa8] sm:$0xff] }
   0x4   :  { %v1037_v3 = vld [vmem:[%s1350_s1 + $0xf8] sm:$0xff]  ;;  %595 = vmatpush.bf16.msra.mxu2 %v1029_v2  ;;  %v1036_v7 = vld [vmem:[%s1350_s1 + $0xf0] sm:$0xff]  ;;  %v1035_v11 = vld [vmem:[%s1350_s1 + $0xe8] sm:$0xff] }
   0x5   :  { %608 = vmatpush.bf16.msra.mxu3 %v1037_v3  ;;  %v1010_v12 = vld [vmem:[%s1350_s1 + $0x20] sm:$0xff]  ;;  %v1009_v17 = vld [vmem:[%s1350_s1 + $0x18] sm:$0xff]  ;;  %v1008_v21 = vld [vmem:[%s1350_s1 + $0x10] sm:$0xff] }
   0x6   :  { %570 = vmatpush.bf16.msra.mxu0 %v1012_v4  ;;  %v1018_v13 = vld [vmem:[%s1350_s1 + $0x60] sm:$0xff]  ;;  %v1017_v18 = vld [vmem:[%s1350_s1 + $0x58] sm:$0xff]  ;;  %v1016_v22 = vld [vmem:[%s1350_s1 + $0x50] sm:$0xff] }
   0x7   :  { %583 = vmatpush.bf16.msra.mxu1 %v1020_v5  ;;  %v1026_v14 = vld [vmem:[%s1350_s1 + $0xa0] sm:$0xff]  ;;  %v1025_v19 = vld [vmem:[%s1350_s1 + $0x98] sm:$0xff] }
   0x8   :  { %596 = vmatpush.bf16.msra.mxu2 %v1028_v6  ;;  %v1034_v15 = vld [vmem:[%s1350_s1 + $0xe0] sm:$0xff]  ;;  %v1033_v20 = vld [vmem:[%s1350_s1 + $0xd8] sm:$0xff] }
   0x9   :  { %609 = vmatpush.bf16.msra.mxu3 %v1036_v7  ;;  %v22_v16 = vld [vmem:[%s1349_s0] sm:$0xff] }
   0xa   :  { %571 = vmatpush.bf16.msra.mxu0 %v1011_v8  ;;  %26 = vst [vmem:[#allocation1] ss:$4 sm:$0xff] %v22_v16 }
   0xb   :  { %584 = vmatpush.bf16.msra.mxu1 %v1019_v9 }
   0xc   :  { %597 = vmatpush.bf16.msra.mxu2 %v1027_v10 }
   0xd   :  { %610 = vmatpush.bf16.msra.mxu3 %v1035_v11 }
   0xe   :  { %572 = vmatpush.bf16.msra.mxu0 %v1010_v12 }
   0xf   :  { %585 = vmatpush.bf16.msra.mxu1 %v1018_v13 }
  0x10   :  { %598 = vmatpush.bf16.msra.mxu2 %v1026_v14 }
  0x11   :  { %611 = vmatpush.bf16.msra.mxu3 %v1034_v15 }
  0x12   :  { %573 = vmatpush.bf16.msra.mxu0 %v1009_v17 }
  0x13   :  { %586 = vmatpush.bf16.msra.mxu1 %v1017_v18 }
  0x14   :  { %10 = vsyncpa [#allocation3], 0  ;;  %599 = vmatpush.bf16.msra.mxu2 %v1025_v19  ;;  %v1024_v23 = vld [vmem:[%s1350_s1 + $0x90] sm:$0xff]  ;;  %v1007_v25 = vld [vmem:[%s1350_s1 + $0x8] sm:$0xff]  ;;  %vm695_vm0 = vcmask 261120   ;;  %vm712_vm1 = vcmask 1041408  }
  0x15   :  { %612 = vmatpush.bf16.msra.mxu3 %v1033_v20  ;;  %v1032_v24 = vld [vmem:[%s1350_s1 + $0xd0] sm:$0xff]  ;;  %v1015_v26 = vld [vmem:[%s1350_s1 + $0x48] sm:$0xff]  ;;  %v1006_v30 = vld [vmem:[%s1350_s1] sm:$0xff]  ;;  %s1105_s27 = smov [#allocation2]  }
  0x16   :  { %574 = vmatpush.bf16.msra.mxu0 %v1008_v21  ;;  %v1023_v27 = vld [vmem:[%s1350_s1 + $0x88] sm:$0xff]  ;;  %v1014_v31 = vld [vmem:[%s1350_s1 + $0x40] sm:$0xff]  ;;  %v1045_v34 = vld [vmem:[%s1350_s1 + $0x138] sm:$0xff]  ;;  %s730_s28 = sshll.u32 %s1105_s27, 4  ;;  %s731_s28 = int_to_ptr.vmem [resolvable:$true] %s730_s28 }
  0x17   :  { %587 = vmatpush.bf16.msra.mxu1 %v1016_v22  ;;  %v1031_v28 = vld [vmem:[%s1350_s1 + $0xc8] sm:$0xff]  ;;  %v1022_v32 = vld [vmem:[%s1350_s1 + $0x80] sm:$0xff]  ;;  %v1053_v35 = vld [vmem:[%s1350_s1 + $0x178] sm:$0xff] }
  0x18   :  { %600 = vmatpush.bf16.msra.mxu2 %v1024_v23  ;;  %v23_v29 = vld [vmem:[%s1349_s0 + $0x8] sm:$0xff]  ;;  %v1030_v33 = vld [vmem:[%s1350_s1 + $0xc0] sm:$0xff]  ;;  %v31_v36 = vld.sshfl [vmem:[#allocation1 + $0x10] sm:$0xff pattern:$0x73625140] }
  0x19   :  { %613 = vmatpush.bf16.msra.mxu3 %v1032_v24  ;;  %28 = vst [vmem:[#allocation1 + $0x20] ss:$4 sm:$0xff] %v23_v29  ;;  %v29_v37 = vld.sshfl [vmem:[#allocation1] sm:$0xff pattern:$0x73625140]  ;;  %v1061_v40 = vld [vmem:[%s1350_s1 + $0x1b8] sm:$0xff]  ;;  %v47_v42 = vpack.c.bf16 %v31_v36, %v31_v36 }
  0x1a   :  { %575 = vmatpush.bf16.msra.mxu0 %v1007_v25  ;;  %v32_v38 = vld.sshfl [vmem:[#allocation1 + $0x18] sm:$0xff pattern:$0x73625140]  ;;  %v30_v39 = vld.sshfl [vmem:[#allocation1 + $0x8] sm:$0xff pattern:$0x73625140]  ;;  %v45_v43 = vpack.c.bf16 %v29_v37, %v29_v37 }
  0x1b   :  { %588 = vmatpush.bf16.msra.mxu1 %v1015_v26  ;;  %v1069_v41 = vld [vmem:[%s1350_s1 + $0x1f8] sm:$0xff]  ;;  %v48_v44 = vpack.c.bf16 %v32_v38, %v32_v38  ;;  %v46_v45 = vpack.c.bf16 %v30_v39, %v30_v39  ;;  %v1044_v46 = vld [vmem:[%s1350_s1 + $0x130] sm:$0xff]  ;;  %v1043_v50 = vld [vmem:[%s1350_s1 + $0x128] sm:$0xff] }
  0x1c   :  { %601 = vmatpush.bf16.msra.mxu2 %v1023_v27  ;;  %v1052_v47 = vld [vmem:[%s1350_s1 + $0x170] sm:$0xff]  ;;  %v1051_v51 = vld [vmem:[%s1350_s1 + $0x168] sm:$0xff]  ;;  %v1042_v54 = vld [vmem:[%s1350_s1 + $0x120] sm:$0xff] }
  0x1d   :  { %614 = vmatpush.bf16.msra.mxu3 %v1031_v28  ;;  %v1060_v48 = vld [vmem:[%s1350_s1 + $0x1b0] sm:$0xff]  ;;  %v1059_v52 = vld [vmem:[%s1350_s1 + $0x1a8] sm:$0xff]  ;;  %v1050_v55 = vld [vmem:[%s1350_s1 + $0x160] sm:$0xff] }
  0x1e   :  { %576 = vmatpush.bf16.msra.mxu0 %v1006_v30  ;;  %v1068_v49 = vld [vmem:[%s1350_s1 + $0x1f0] sm:$0xff]  ;;  %v1067_v53 = vld [vmem:[%s1350_s1 + $0x1e8] sm:$0xff]  ;;  %v1058_v56 = vld [vmem:[%s1350_s1 + $0x1a0] sm:$0xff] }
  0x1f   :  { %589 = vmatpush.bf16.msra.mxu1 %v1014_v31  ;;  %v1066_v57 = vld [vmem:[%s1350_s1 + $0x1e0] sm:$0xff]  ;;  %v1041_v58 = vld [vmem:[%s1350_s1 + $0x118] sm:$0xff]  ;;  %v1040_v62 = vld [vmem:[%s1350_s1 + $0x110] sm:$0xff] }
  0x20   :  { %602 = vmatpush.bf16.msra.mxu2 %v1022_v32  ;;  %v1049_v59 = vld [vmem:[%s1350_s1 + $0x158] sm:$0xff]  ;;  %v1048_v63 = vld [vmem:[%s1350_s1 + $0x150] sm:$0xff]  ;;  %v1039_v2 = vld [vmem:[%s1350_s1 + $0x108] sm:$0xff] }
  0x21   :  { %615 = vmatpush.bf16.msra.mxu3 %v1030_v33  ;;  %577 = vmatmul.bf16.vlgmr.msra.gmra.mxu0 %v45_v43  ;;  %v1057_v60 = vld [vmem:[%s1350_s1 + $0x198] sm:$0xff]  ;;  %v1056_v0 = vld [vmem:[%s1350_s1 + $0x190] sm:$0xff]  ;;  %v1047_v3 = vld [vmem:[%s1350_s1 + $0x148] sm:$0xff] }
  0x22   :  { %621 = vmatpush.bf16.msrb.mxu0 %v1045_v34  ;;  %590 = vmatmul.bf16.vlgmr.msra.gmra.mxu1 %v46_v45  ;;  %v1065_v61 = vld [vmem:[%s1350_s1 + $0x1d8] sm:$0xff]  ;;  %v1064_v1 = vld [vmem:[%s1350_s1 + $0x1d0] sm:$0xff]  ;;  %v1055_v4 = vld [vmem:[%s1350_s1 + $0x188] sm:$0xff] }
  0x23   :  { %634 = vmatpush.bf16.msrb.mxu1 %v1053_v35  ;;  %603 = vmatmul.bf16.vlgmr.msra.gmra.mxu2 %v47_v42  ;;  %v1063_v5 = vld [vmem:[%s1350_s1 + $0x1c8] sm:$0xff]  ;;  %v1038_v6 = vld [vmem:[%s1350_s1 + $0x100] sm:$0xff]  ;;  %v35_v12 = vld.sshfl [vmem:[#allocation1 + $0x30] sm:$0xff pattern:$0x73625140] }
  0x24   :  { %647 = vmatpush.bf16.msrb.mxu2 %v1061_v40  ;;  %616 = vmatmul.bf16.vlgmr.msra.gmra.mxu3 %v48_v44  ;;  %v1046_v7 = vld [vmem:[%s1350_s1 + $0x140] sm:$0xff]  ;;  %v34_v11 = vld.sshfl [vmem:[#allocation1 + $0x28] sm:$0xff pattern:$0x73625140]  ;;  %v51_v16 = vpack.c.bf16 %v35_v12, %v35_v12 }
  0x25   :  { %660 = vmatpush.bf16.msrb.mxu3 %v1069_v41  ;;  %v1054_v8 = vld [vmem:[%s1350_s1 + $0x180] sm:$0xff]  ;;  %v36_v13 = vld.sshfl [vmem:[#allocation1 + $0x38] sm:$0xff pattern:$0x73625140]  ;;  %v50_v15 = vpack.c.bf16 %v34_v11, %v34_v11  ;;  %v1071_v18 = vld [vmem:[%s1352_s3 + $0x8] sm:$0xff] }
  0x26   :  { %622 = vmatpush.bf16.msrb.mxu0 %v1044_v46  ;;  %v1062_v9 = vld [vmem:[%s1350_s1 + $0x1c0] sm:$0xff]  ;;  %v52_v17 = vpack.c.bf16 %v36_v13, %v36_v13 }
  0x27   :  { %635 = vmatpush.bf16.msrb.mxu1 %v1052_v47  ;;  %v33_v10 = vld.sshfl [vmem:[#allocation1 + $0x20] sm:$0xff pattern:$0x73625140] }
  0x28   :  { %648 = vmatpush.bf16.msrb.mxu2 %v1060_v48  ;;  %v49_v14 = vpack.c.bf16 %v33_v10, %v33_v10  ;;  %v1070_v24 = vld [vmem:[%s1352_s3] sm:$0xff] }
  0x29   :  { %661 = vmatpush.bf16.msrb.mxu3 %v1068_v49  ;;  %v1073_v26 = vld [vmem:[%s1351_s2] ss:$0 sm:$0xff] }
  0x2a   :  { %623 = vmatpush.bf16.msrb.mxu0 %v1043_v50  ;;  %v1074_v47 = vld [vmem:[%s1353_s4] ss:$0 sm:$0xff]  ;;  %s732_s4 = sshll.u32 %s1354_s5, 4  ;;  %s733_s4 = int_to_ptr.hbm [resolvable:$true] %s732_s4 }
  0x2b   :  { %636 = vmatpush.bf16.msrb.mxu1 %v1051_v51 }
  0x2c   :  { %649 = vmatpush.bf16.msrb.mxu2 %v1059_v52 }
  0x2d   :  { %662 = vmatpush.bf16.msrb.mxu3 %v1067_v53 }
  0x2e   :  { %624 = vmatpush.bf16.msrb.mxu0 %v1042_v54 }
  0x2f   :  { %637 = vmatpush.bf16.msrb.mxu1 %v1050_v55 }
  0x30   :  { %650 = vmatpush.bf16.msrb.mxu2 %v1058_v56 }
  0x31   :  { %663 = vmatpush.bf16.msrb.mxu3 %v1066_v57 }
  0x32   :  { %625 = vmatpush.bf16.msrb.mxu0 %v1041_v58 }
  0x33   :  { %638 = vmatpush.bf16.msrb.mxu1 %v1049_v59 }
  0x34   :  { %651 = vmatpush.bf16.msrb.mxu2 %v1057_v60 }
  0x35   :  { %664 = vmatpush.bf16.msrb.mxu3 %v1065_v61 }
  0x36   :  { %626 = vmatpush.bf16.msrb.mxu0 %v1040_v62 }
  0x37   :  { %639 = vmatpush.bf16.msrb.mxu1 %v1048_v63 }
  0x38   :  { %652 = vmatpush.bf16.msrb.mxu2 %v1056_v0 }
  0x39   :  { %665 = vmatpush.bf16.msrb.mxu3 %v1064_v1 }
  0x3a   :  { %627 = vmatpush.bf16.msrb.mxu0 %v1039_v2 }
  0x3b   :  { %640 = vmatpush.bf16.msrb.mxu1 %v1047_v3 }
  0x3c   :  { %653 = vmatpush.bf16.msrb.mxu2 %v1055_v4 }
  0x3d   :  { %666 = vmatpush.bf16.msrb.mxu3 %v1063_v5 }
  0x3e   :  { %628 = vmatpush.bf16.msrb.mxu0 %v1038_v6 }
  0x3f   :  { %641 = vmatpush.bf16.msrb.mxu1 %v1046_v7 }
  0x40   :  { %654 = vmatpush.bf16.msrb.mxu2 %v1054_v8 }
  0x41   :  { %667 = vmatpush.bf16.msrb.mxu3 %v1062_v9  ;;  %629 = vmatmul.bf16.vlgmr.msrb.gmra.mxu0 %v49_v14 }
  0x42   :  { %642 = vmatmul.bf16.vlgmr.msrb.gmra.mxu1 %v50_v15  ;;  %705 = vmatpush.bf16.msra.mxu0 %v1071_v18 }
  0x43   :  { %655 = vmatmul.bf16.vlgmr.msrb.gmra.mxu2 %v51_v16 }
  0x44   :  { %668 = vmatmul.bf16.vlgmr.msrb.gmra.mxu3 %v52_v17 }
  0x46   :  { %706 = vmatpush.bf16.msra.mxu0 %v1070_v24 }
  0x9e   :  { %v578_v19 = vpop.f32.mrf.mxu0 }
  0x9f   :  { %v591_v20 = vpop.f32.mrf.mxu1  ;;  %v579_v29 = vadd.f32 %v1073_v26, %v578_v19 }
  0xa1   :  { %v592_v30 = vadd.f32 %v591_v20, %v579_v29 }
  0xa6   :  { %v604_v21 = vpop.f32.mrf.mxu2  ;;  %v580_v23 = vpop.f32.mrf.mxu0 }
  0xa7   :  { %v617_v22 = vpop.f32.mrf.mxu3  ;;  %v593_v25 = vpop.f32.mrf.mxu1  ;;  %v605_v31 = vadd.f32 %v604_v21, %v592_v30 }
  0xa9   :  { %v618_v32 = vadd.f32 %v617_v22, %v605_v31 }
  0xae   :  { %v606_v27 = vpop.f32.mrf.mxu2 }
  0xaf   :  { %v619_v28 = vpop.f32.mrf.mxu3 }
  0xbe   :  { %v630_v33 = vpop.f32.mrf.mxu0 }
  0xbf   :  { %v643_v34 = vpop.f32.mrf.mxu1  ;;  %v631_v35 = vadd.f32 %v630_v33, %v618_v32 }
  0xc1   :  { %v644_v36 = vadd.f32 %v643_v34, %v631_v35 }
  0xc6   :  { %v656_v37 = vpop.f32.mrf.mxu2  ;;  %v632_v40 = vpop.f32.mrf.mxu0 }
  0xc7   :  { %v669_v38 = vpop.f32.mrf.mxu3  ;;  %v657_v39 = vadd.f32 %v656_v37, %v644_v36  ;;  %v645_v41 = vpop.f32.mrf.mxu1 }
  0xc9   :  { %v670_v42 = vadd.f32 %v669_v38, %v657_v39 }
  0xcb   :  { %v673_v43 = vmax.f32 %v670_v42, 0.0 }
  0xcd   :  { %v674_v44 = vpack.c.bf16 %v673_v43, %v673_v43 }
  0xce   :  { %v658_v45 = vpop.f32.mrf.mxu2 }
  0xcf   :  { %v671_v46 = vpop.f32.mrf.mxu3  ;;  %1005 = vmatmul.msk.bf16.vlgmr.msra.gmra.mxu0 %vm695_vm0, %v674_v44 }
 0x14c   :  { %v708_v48 = vpop.f32.mrf.mxu0 }
 0x14d   :  { %v709_v49 = vadd.f32 %v1074_v47, %v708_v48 }
 0x14f   :  { %v713_v50 = vsel %vm712_vm1, %v709_v49, -inf }
 0x150   :  { %714 = vmax.xlane.f32.xlu0 %v713_v50 }
 0x154   :  { %v710_v51 = vpop.f32.mrf.mxu0 }
 0x1c3   :  { %v715_v52 = vpop.xlane.xlu0 %714 }
 0x1c4   :  { %v716_v53 = vsub.f32 %v709_v49, %v715_v52 }
 0x1c6   :  { %v717_v54 = vmul.f32 1.442695, %v716_v53 }
 0x1c8   :  { %1075 = vpow2.f32 %v717_v54 }
 0x1ce   :  { %v1076_v55 = vpop.eup %1075 }
 0x1cf   :  { %v719_v56 = vsel %vm712_vm1, %v1076_v55, 0.0 }
 0x1d0   :  { %720 = vadd.xlane.f32.xlu0 %v719_v56 }
 0x243   :  { %v721_v57 = vpop.xlane.xlu0 %720 }
 0x244   :  { %1077 = vrcp.f32 %v721_v57 }
 0x24a   :  { %v1078_v58 = vpop.eup %1077 }
 0x24b   :  { %v723_v59 = vmul.f32 %v1078_v58, %v1076_v55 }
 0x24d   :  { %724 = vst [vmem:[#allocation2] sm:$0x3] %v723_v59 }
 0x24e   :  { %735 = dma.vmem_to_hbm [thread:$0]  %s731_s28, 32, %s733_s4, [#allocation3]  }
 0x24f   :  { %1103 = dma.done.wait [#allocation3], 32  }
 0x250   :  { %1104 = vsyncadd [#allocation3], 4294967264 }
 0x251   :  { %740 = vsyncpa [#allocation3], 1 }

</bundles_post_ra>
